<compile_context>
chip_gen: v6e
topology: v6e:2x2x1
jax: 0.10.0
libtpu: 0.0.40
codegen_flags: <defaults>
</compile_context>

<pallas_src>
import functools
import math

import jax
import jax.numpy as jnp
from jax.experimental import pallas as pl
from jax.experimental.pallas import tpu as pltpu

_LANE = 128
_MXU_M = 256                      # M-tile alignment that fills the v6e/v7x MXU
_DEF_MAX_TILE = 1024              # default max batch-tile rows
_VMEM_BUDGET = 40 * 1024 * 1024   # conservative; leaves headroom on v7x (64 MiB)


def _round_up(v, m):
    return ((v + m - 1) // m) * m


def _mlp_kernel(*refs, num_linear, compute_dtype):
    """Fused MLP forward for one (tb, pad_in) batch tile.

    refs = (x_ref, w0, b0, w1, b1, ..., w_last_row, b_last_row, out_ref).
    Hidden layers run on the MXU with f32 accumulation; the (d_last -> 1)
    output layer is an elementwise multiply + lane reduction on the VPU/XLU and
    the (tb, 1) result column is relaid out to (1, tb/128, 128) so the store
    and the HBM writeback are lane-dense.
    """
    x_ref = refs[0]
    out_ref = refs[-1]
    prefs = refs[1:-1]

    h = x_ref[...]                                    # (tb, pad_in), compute dtype
    for i in range(num_linear - 1):
        w = prefs[2 * i][...]                         # (pad_in_i, pad_out_i)
        b = prefs[2 * i + 1][...]                     # (1, pad_out_i) f32
        acc = jnp.dot(h, w, preferred_element_type=jnp.float32)
        h = jnp.maximum(acc + b, 0.0)                 # f32
        if compute_dtype != jnp.float32 and i + 1 < num_linear - 1:
            h = h.astype(compute_dtype)               # bf16 feed for next MXU pass

    w_last = prefs[-2][...]                           # (1, pad_last) f32, W_out^T
    b_last = prefs[-1][...]                           # (1, 128) f32, bias in lanes
    tb = h.shape[0]
    s = jnp.sum(h * w_last, axis=-1, keepdims=True)   # (tb, 1) f32 (VPU + XLU)
    s = s.reshape(tb // _LANE, _LANE) + b_last        # lane-dense relayout
    out_ref[...] = s.reshape(1, tb // _LANE, _LANE).astype(out_ref.dtype)


def pack_params(weights, biases, *, compute_dtype=jnp.float32):
    """Pack each layer into its own lane/sublane-padded array (per-layer dims).

    weights[i]: (d_in_i, d_out_i)  (transposed vs. PyTorch's (out, in))
    biases[i]:  (1, d_out_i)
    Hidden weights are stored in `compute_dtype`; biases and the VPU-evaluated
    output layer stay f32.  Call ONCE per model and reuse (see
    make_meta_neuralnet).
    """
    compute_dtype = jnp.dtype(compute_dtype)
    num_linear = len(weights)
    packed = []
    for i in range(num_linear - 1):
        w = jnp.asarray(weights[i], jnp.float32)
        b = jnp.asarray(biases[i], jnp.float32).reshape(1, -1)
        d_in, d_out = w.shape
        p_in, p_out = _round_up(d_in, _LANE), _round_up(d_out, _LANE)
        w_pad = (jnp.zeros((p_in, p_out), compute_dtype)
                 .at[:d_in, :d_out].set(w.astype(compute_dtype)))
        b_pad = jnp.zeros((1, p_out), jnp.float32).at[:, :d_out].set(b)
        packed += [w_pad, b_pad]
    # Output layer (d_last -> 1): weight stored transposed as one row, bias
    # (scalar) replicated across 128 lanes (matches the relaid-out result).
    w_last = jnp.asarray(weights[-1], jnp.float32)    # (d_last, 1)
    b_last = jnp.asarray(biases[-1], jnp.float32).reshape(-1)[0]
    d_last = w_last.shape[0]
    p_last = _round_up(d_last, _LANE)
    wl = jnp.zeros((1, p_last), jnp.float32).at[:, :d_last].set(w_last[:, 0])
    bl = jnp.full((1, _LANE), b_last, jnp.float32)
    packed += [wl, bl]
    return tuple(packed)


def _choose_batch_tile(batch, pad_in, max_width, params_bytes, x_itemsize,
                       block_batch, vmem_budget):
    """Large, 256-aligned batch tile capped by an explicit VMEM budget."""
    if block_batch is None:
        tb = min(_round_up(batch, _MXU_M), _DEF_MAX_TILE)
    else:
        tb = _round_up(block_batch, _MXU_M)
    tb = max(tb, _MXU_M)

    def tile_bytes(t):
        x_blk = 2 * t * pad_in * x_itemsize           # double-buffered input tile
        out_blk = 2 * t * 4                           # double-buffered output tile
        act = 4 * t * max_width * 4                   # f32 activation working set
        return x_blk + out_blk + act

    while tb > _MXU_M and params_bytes + tile_bytes(tb) > vmem_budget:
        tb = _round_up(tb // 2, _MXU_M)
    return tb


def _forward_packed(x, packed, num_linear, *, compute_dtype, block_batch,
                    vmem_budget):
    compute_dtype = jnp.dtype(compute_dtype)
    batch, in_ch = x.shape
    pad_in = packed[0].shape[0]
    widths = [packed[2 * i].shape[1] for i in range(num_linear - 1)]
    max_width = max([pad_in] + widths)
    params_bytes = sum(int(p.size) * p.dtype.itemsize for p in packed)
    if params_bytes > vmem_budget:
        # TODO(synk): stream params layer-by-layer (params in pl.ANY/HBM +
        # pltpu.emit_pipeline over the layer axis) when the packed parameters
        # alone exceed the VMEM budget (matters on v7x's 64 MiB VMEM).
        raise ValueError(
            f"packed params ({params_bytes} B) exceed the VMEM budget "
            f"({vmem_budget} B); layer streaming not implemented")

    tb = _choose_batch_tile(batch, pad_in, max_width, params_bytes,
                            compute_dtype.itemsize, block_batch, vmem_budget)
    bp = _round_up(batch, tb)
    n_tiles = bp // tb

    x_pad = (jnp.zeros((bp, pad_in), compute_dtype)
             .at[:batch, :in_ch].set(x.astype(compute_dtype)))

    kernel = functools.partial(_mlp_kernel, num_linear=num_linear,
                               compute_dtype=compute_dtype)

    in_specs = [pl.BlockSpec((tb, pad_in), lambda i: (i, 0))]
    # Whole-array VMEM operands: resident across the grid (single copy, 1 DMA).
    in_specs += [pl.BlockSpec(memory_space=pltpu.MemorySpace.VMEM)
                 for _ in packed]

    out = pl.pallas_call(
        kernel,
        out_shape=jax.ShapeDtypeStruct((n_tiles, tb // _LANE, _LANE),
                                       jnp.float32),
        grid=(n_tiles,),
        in_specs=in_specs,
        out_specs=pl.BlockSpec((1, tb // _LANE, _LANE), lambda i: (i, 0, 0)),
        compiler_params=pltpu.CompilerParams(
            dimension_semantics=("parallel",),
            vmem_limit_bytes=64 * 1024 * 1024,
        ),
    )(x_pad, *packed)
    # (n_tiles, tb/128, 128) row-major == batch order; take the real rows.
    return out.reshape(bp, 1)[:batch]


def make_meta_neuralnet(weights, biases, *, compute_dtype=jnp.float32,
                        block_batch=None, vmem_budget=_VMEM_BUDGET):
    """Packs parameters ONCE and returns a jitted forward(x) -> (B, 1)."""
    packed = pack_params(weights, biases, compute_dtype=compute_dtype)
    num_linear = len(weights)

    @jax.jit
    def forward(x):
        return _forward_packed(x, packed, num_linear,
                               compute_dtype=compute_dtype,
                               block_batch=block_batch,
                               vmem_budget=vmem_budget)

    return forward


def meta_neuralnet_forward(x, weights, biases, *, compute_dtype=jnp.float32,
                           block_batch=None):
    """One-shot convenience wrapper (packs per call; prefer make_meta_neuralnet
    when the predictor is evaluated many times)."""
    packed = pack_params(weights, biases, compute_dtype=compute_dtype)
    return _forward_packed(x, packed, len(weights),
                           compute_dtype=compute_dtype,
                           block_batch=block_batch,
                           vmem_budget=_VMEM_BUDGET)


def xavier_uniform(key, fan_in, fan_out):
    """Matches torch.nn.init.xavier_uniform_ bound; returns (fan_in, fan_out),
    i.e. the transpose of PyTorch's (out, in) weight."""
    bound = math.sqrt(6.0 / (fan_in + fan_out))
    return jax.random.uniform(
        key, (fan_in, fan_out), dtype=jnp.float32, minval=-bound, maxval=bound)


def make_params(key, in_channel, layer_width):
    """Builds [input_layer, layer_1..layer_{n-1}, output_layer] params."""
    dims = [in_channel] + list(layer_width) + [1]
    weights, biases = [], []
    for i in range(len(dims) - 1):
        key, sub = jax.random.split(key)
        weights.append(xavier_uniform(sub, dims[i], dims[i + 1]))
        biases.append(jnp.zeros((1, dims[i + 1]), dtype=jnp.float32))
    return weights, biases


def reference_forward(x, weights, biases):
    h = x
    for i, (w, b) in enumerate(zip(weights, biases)):
        h = h @ w + b
        if i < len(weights) - 1:
            h = jnp.maximum(h, 0.0)
    return h


if __name__ == "__main__":
    key = jax.random.PRNGKey(0)
    in_channel = 16
    layer_width = [32, 32]   # MetaNeuralnetTorch(16, num_layer=2, layer_width=[32, 32])
    kx, kx2, kp = jax.random.split(key, 3)
    weights, biases = make_params(kp, in_channel, layer_width)

    forward = make_meta_neuralnet(weights, biases)   # params packed once, jitted

    # Tiny batch (padded into a single 256-row tile).
    batch = 8
    x = jax.random.normal(kx, (batch, in_channel), dtype=jnp.float32)
    out = jax.block_until_ready(forward(x))
    ref = reference_forward(x, weights, biases)
    assert out.shape == (batch, 1)
    assert jnp.allclose(out, ref, atol=1e-4, rtol=1e-4), (out, ref)

    # Medium batch through the same cached-params forward.
    big_batch = 200
    xb = jax.random.normal(kx2, (big_batch, in_channel), dtype=jnp.float32)
    out_b = jax.block_until_ready(forward(xb))
    ref_b = reference_forward(xb, weights, biases)
    assert out_b.shape == (big_batch, 1)
    assert jnp.allclose(out_b, ref_b, atol=1e-4, rtol=1e-4), (out_b, ref_b)

    # Multi-tile grid path (grid > 1, "parallel" batch axis, params resident).
    huge = 700
    kx3 = jax.random.fold_in(key, 3)
    xh = jax.random.normal(kx3, (huge, in_channel), dtype=jnp.float32)
    out_h = jax.block_until_ready(
        meta_neuralnet_forward(xh, weights, biases, block_batch=256))
    ref_h = reference_forward(xh, weights, biases)
    assert out_h.shape == (huge, 1)
    assert jnp.allclose(out_h, ref_h, atol=1e-4, rtol=1e-4), (out_h, ref_h)

    print("KERNEL_OK")
</pallas_src>

<mosaic_0001>
module attributes {stable_mosaic.version = 11 : i64} {
  func.func @_mlp_kernel(%arg0: i32, %arg1: memref<256x128xf32, #tpu.memory_space<vmem>>, %arg2: memref<128x128xf32, #tpu.memory_space<vmem>>, %arg3: memref<1x128xf32, #tpu.memory_space<vmem>>, %arg4: memref<128x128xf32, #tpu.memory_space<vmem>>, %arg5: memref<1x128xf32, #tpu.memory_space<vmem>>, %arg6: memref<1x128xf32, #tpu.memory_space<vmem>>, %arg7: memref<1x128xf32, #tpu.memory_space<vmem>>, %arg8: memref<1x2x128xf32, #tpu.memory_space<vmem>>) attributes {dimension_semantics = [#tpu.dimension_semantics<parallel>], iteration_bounds = array<i64: 1>, scalar_prefetch = 0 : i64, scratch_operands = 0 : i64, tpu.core_type = #tpu.core_type<tc>, window_params = [{transform_indices = @transform_0, window_bounds = array<i64: 256, 128>}, {pipeline_mode = #tpu.pipeline_mode<synchronous>, transform_indices = @transform_1, window_bounds = array<i64: 128, 128>}, {pipeline_mode = #tpu.pipeline_mode<synchronous>, transform_indices = @transform_2, window_bounds = array<i64: 1, 128>}, {pipeline_mode = #tpu.pipeline_mode<synchronous>, transform_indices = @transform_3, window_bounds = array<i64: 128, 128>}, {pipeline_mode = #tpu.pipeline_mode<synchronous>, transform_indices = @transform_4, window_bounds = array<i64: 1, 128>}, {pipeline_mode = #tpu.pipeline_mode<synchronous>, transform_indices = @transform_5, window_bounds = array<i64: 1, 128>}, {pipeline_mode = #tpu.pipeline_mode<synchronous>, transform_indices = @transform_6, window_bounds = array<i64: 1, 128>}, {transform_indices = @transform_7, window_bounds = array<i64: 1, 2, 128>}]} {
    %c0 = arith.constant 0 : index
    %c0_0 = arith.constant 0 : index
    %0 = vector.load %arg1[%c0, %c0_0] : memref<256x128xf32, #tpu.memory_space<vmem>>, vector<256x128xf32>
    %c0_1 = arith.constant 0 : index
    %c0_2 = arith.constant 0 : index
    %1 = vector.load %arg2[%c0_1, %c0_2] : memref<128x128xf32, #tpu.memory_space<vmem>>, vector<128x128xf32>
    %c0_3 = arith.constant 0 : index
    %c0_4 = arith.constant 0 : index
    %2 = vector.load %arg3[%c0_3, %c0_4] : memref<1x128xf32, #tpu.memory_space<vmem>>, vector<1x128xf32>
    %cst = arith.constant dense<0.000000e+00> : vector<256x128xf32>
    %3 = tpu.matmul %0, %1, %cst {dimension_numbers = #tpu.dot_dimension_numbers<[1], [0], [0], [1], [0, 0, 1, 1], [], []>} : vector<256x128xf32>, vector<128x128xf32>, vector<256x128xf32> -> vector<256x128xf32>
    %4 = vector.broadcast %2 : vector<1x128xf32> to vector<256x128xf32>
    %5 = arith.addf %3, %4 : vector<256x128xf32>
    %cst_5 = arith.constant 0.000000e+00 : f32
    %6 = vector.broadcast %cst_5 : f32 to vector<256x128xf32>
    %7 = arith.maximumf %5, %6 : vector<256x128xf32>
    %c0_6 = arith.constant 0 : index
    %c0_7 = arith.constant 0 : index
    %8 = vector.load %arg4[%c0_6, %c0_7] : memref<128x128xf32, #tpu.memory_space<vmem>>, vector<128x128xf32>
    %c0_8 = arith.constant 0 : index
    %c0_9 = arith.constant 0 : index
    %9 = vector.load %arg5[%c0_8, %c0_9] : memref<1x128xf32, #tpu.memory_space<vmem>>, vector<1x128xf32>
    %cst_10 = arith.constant dense<0.000000e+00> : vector<256x128xf32>
    %10 = tpu.matmul %7, %8, %cst_10 {dimension_numbers = #tpu.dot_dimension_numbers<[1], [0], [0], [1], [0, 0, 1, 1], [], []>} : vector<256x128xf32>, vector<128x128xf32>, vector<256x128xf32> -> vector<256x128xf32>
    %11 = vector.broadcast %9 : vector<1x128xf32> to vector<256x128xf32>
    %12 = arith.addf %10, %11 : vector<256x128xf32>
    %cst_11 = arith.constant 0.000000e+00 : f32
    %13 = vector.broadcast %cst_11 : f32 to vector<256x128xf32>
    %14 = arith.maximumf %12, %13 : vector<256x128xf32>
    %c0_12 = arith.constant 0 : index
    %c0_13 = arith.constant 0 : index
    %15 = vector.load %arg6[%c0_12, %c0_13] : memref<1x128xf32, #tpu.memory_space<vmem>>, vector<1x128xf32>
    %c0_14 = arith.constant 0 : index
    %c0_15 = arith.constant 0 : index
    %16 = vector.load %arg7[%c0_14, %c0_15] : memref<1x128xf32, #tpu.memory_space<vmem>>, vector<1x128xf32>
    %17 = vector.broadcast %15 : vector<1x128xf32> to vector<256x128xf32>
    %18 = arith.mulf %14, %17 : vector<256x128xf32>
    %cst_16 = arith.constant dense<0.000000e+00> : vector<256xf32>
    %19 = vector.multi_reduction <add>, %18, %cst_16 [1] : vector<256x128xf32> to vector<256xf32>
    %20 = vector.shape_cast %19 : vector<256xf32> to vector<256x1xf32>
    %21 = vector.shape_cast %20 : vector<256x1xf32> to vector<2x128xf32>
    %22 = vector.broadcast %16 : vector<1x128xf32> to vector<2x128xf32>
    %23 = arith.addf %21, %22 : vector<2x128xf32>
    %24 = vector.shape_cast %23 : vector<2x128xf32> to vector<1x2x128xf32>
    %c0_17 = arith.constant 0 : index
    %c0_18 = arith.constant 0 : index
    %c0_19 = arith.constant 0 : index
    %25 = vector.load %arg8[%c0_17, %c0_18, %c0_19] : memref<1x2x128xf32, #tpu.memory_space<vmem>>, vector<1x2x128xf32>
    tpu.vector_store %arg8[%c0_17, %c0_18, %c0_19], %24 {strides = array<i32>} : memref<1x2x128xf32, #tpu.memory_space<vmem>>, vector<1x2x128xf32>,
    return
  }
  func.func @transform_0(%arg0: i32) -> (i32, i32) {
    %c0_i32 = arith.constant 0 : i32
    %c0_i32_0 = arith.constant 0 : i32
    return %arg0, %c0_i32 : i32, i32
  }
  func.func @transform_1(%arg0: i32) -> (i32, i32) {
    %c0_i32 = arith.constant 0 : i32
    %c0_i32_0 = arith.constant 0 : i32
    %c0_i32_1 = arith.constant 0 : i32
    return %c0_i32, %c0_i32_0 : i32, i32
  }
  func.func @transform_2(%arg0: i32) -> (i32, i32) {
    %c0_i32 = arith.constant 0 : i32
    %c0_i32_0 = arith.constant 0 : i32
    %c0_i32_1 = arith.constant 0 : i32
    return %c0_i32, %c0_i32_0 : i32, i32
  }
  func.func @transform_3(%arg0: i32) -> (i32, i32) {
    %c0_i32 = arith.constant 0 : i32
    %c0_i32_0 = arith.constant 0 : i32
    %c0_i32_1 = arith.constant 0 : i32
    return %c0_i32, %c0_i32_0 : i32, i32
  }
  func.func @transform_4(%arg0: i32) -> (i32, i32) {
    %c0_i32 = arith.constant 0 : i32
    %c0_i32_0 = arith.constant 0 : i32
    %c0_i32_1 = arith.constant 0 : i32
    return %c0_i32, %c0_i32_0 : i32, i32
  }
  func.func @transform_5(%arg0: i32) -> (i32, i32) {
    %c0_i32 = arith.constant 0 : i32
    %c0_i32_0 = arith.constant 0 : i32
    %c0_i32_1 = arith.constant 0 : i32
    return %c0_i32, %c0_i32_0 : i32, i32
  }
  func.func @transform_6(%arg0: i32) -> (i32, i32) {
    %c0_i32 = arith.constant 0 : i32
    %c0_i32_0 = arith.constant 0 : i32
    %c0_i32_1 = arith.constant 0 : i32
    return %c0_i32, %c0_i32_0 : i32, i32
  }
  func.func @transform_7(%arg0: i32) -> (i32, i32, i32) {
    %c0_i32 = arith.constant 0 : i32
    %c0_i32_0 = arith.constant 0 : i32
    %c0_i32_1 = arith.constant 0 : i32
    return %arg0, %c0_i32, %c0_i32_0 : i32, i32, i32
  }
}

</mosaic_0001>

<bundles_post_ra>
// kernel: forward.1
= control target key start
LH: loop header
LB: loop body
LE: loop exit
PB: predicated region body
PF: predicated region fallthrough
CT: control target
= control target key end

     0   :  { %vm977_vm0 = vcmask 130112   ;;  %vm984_vm1 = vcmask 195712   ;;  %vm991_vm2 = vcmask 261312   ;;  %vm998_vm3 = vcmask 326912   ;;  %s1916_s1 = inlined_call_operand.vmem [shape: f32[128,128], index: 1, kind: input, shape index: {}]   ;;  %s1917_s0 = inlined_call_operand.vmem [shape: f32[256,128], index: 0, kind: input, shape index: {}]   ;;  %s1918_s3 = inlined_call_operand.vmem [shape: f32[128,128], index: 3, kind: input, shape index: {}]   ;;  %s1919_s6 = inlined_call_operand.vmem [shape: f32[1,128], index: 6, kind: input, shape index: {}, may-alias: {2,4,6}]   ;;  %s1920_s2 = inlined_call_operand.vmem [shape: f32[1,128], index: 2, kind: input, shape index: {}, may-alias: {2,4,6}]   ;;  %s1921_s4 = inlined_call_operand.vmem [shape: f32[1,128], index: 4, kind: input, shape index: {}, may-alias: {2,4,6}]   ;;  %s1922_s5 = inlined_call_operand.vmem [shape: f32[1,128], index: 5, kind: input, shape index: {}]   ;;  %s1923_s7 = inlined_call_operand.vmem [shape: f32[1,2,128], index: 7, kind: output, shape index: {}]  }
   0x1   :  { %v73_v0 = vld [vmem:[%s1916_s1 + $0x78] sm:$0xff]  ;;  %v72_v1 = vld [vmem:[%s1916_s1 + $0x70] sm:$0xff]  ;;  %v71_v2 = vld [vmem:[%s1916_s1 + $0x68] sm:$0xff]  ;;  %vm1005_vm4 = vcmask 392512   ;;  %vm1012_vm5 = vcmask 458112   ;;  %vm1019_vm6 = vcmask 523712  }
   0x2   :  { %1264 = vmatprep.subr.mxu0 %v73_v0  ;;  %v70_v3 = vld [vmem:[%s1916_s1 + $0x60] sm:$0xff]  ;;  %v69_v5 = vld [vmem:[%s1916_s1 + $0x58] sm:$0xff]  ;;  %v68_v6 = vld [vmem:[%s1916_s1 + $0x50] sm:$0xff]  ;;  %vm1026_vm7 = vcmask 589312   ;;  %vm1033_vm8 = vcmask 654912   ;;  %vm1040_vm9 = vcmask 720512  }
   0x3   :  { %1265 = vmatpush3.msra.mxu0 %v73_v0  ;;  %v26_v4 = vld [vmem:[%s1917_s0] sm:$0xff]  ;;  %v67_v7 = vld [vmem:[%s1916_s1 + $0x48] sm:$0xff]  ;;  %v65_v9 = vld [vmem:[%s1916_s1 + $0x38] sm:$0xff]  ;;  %vm1047_vm10 = vcmask 786112   ;;  %vm1054_vm11 = vcmask 851712   ;;  %vm1061_vm12 = vcmask 917312  }
   0x4   :  { %1266 = vmatprep.subr.mxu0 %v72_v1  ;;  %1296 = vmatprep.mubr.f32.mxu0 %v26_v4  ;;  %v66_v8 = vld [vmem:[%s1916_s1 + $0x40] sm:$0xff]  ;;  %v64_v10 = vld [vmem:[%s1916_s1 + $0x30] sm:$0xff]  ;;  %v353_v11 = vld [vmem:[%s1918_s3 + $0x78] sm:$0xff]  ;;  %vm1068_vm13 = vcmask 982912   ;;  %vm1075_vm14 = vcmask 1048512   ;;  %vm1156_vm15 = vcmask 1041409  }
   0x5   :  { %1267 = vmatpush3.msra.mxu0 %v72_v1  ;;  %v352_v12 = vld [vmem:[%s1918_s3 + $0x70] sm:$0xff]  ;;  %1344 = vmatprep.subr.mxu1 %v353_v11  ;;  %v63_v13 = vld [vmem:[%s1916_s1 + $0x28] sm:$0xff]  ;;  %v62_v15 = vld [vmem:[%s1916_s1 + $0x20] sm:$0xff] }
   0x6   :  { %1268 = vmatprep.subr.mxu0 %v71_v2  ;;  %1345 = vmatpush3.msra.mxu1 %v353_v11  ;;  %v351_v14 = vld [vmem:[%s1918_s3 + $0x68] sm:$0xff]  ;;  %v350_v16 = vld [vmem:[%s1918_s3 + $0x60] sm:$0xff]  ;;  %v61_v17 = vld [vmem:[%s1916_s1 + $0x18] sm:$0xff] }
   0x7   :  { %1269 = vmatpush3.msra.mxu0 %v71_v2  ;;  %1346 = vmatprep.subr.mxu1 %v352_v12  ;;  %v349_v18 = vld [vmem:[%s1918_s3 + $0x58] sm:$0xff]  ;;  %v60_v19 = vld [vmem:[%s1916_s1 + $0x10] sm:$0xff]  ;;  %v59_v21 = vld [vmem:[%s1916_s1 + $0x8] sm:$0xff] }
   0x8   :  { %1270 = vmatprep.subr.mxu0 %v70_v3  ;;  %1347 = vmatpush3.msra.mxu1 %v352_v12  ;;  %v348_v20 = vld [vmem:[%s1918_s3 + $0x50] sm:$0xff]  ;;  %v347_v22 = vld [vmem:[%s1918_s3 + $0x48] sm:$0xff]  ;;  %v58_v23 = vld [vmem:[%s1916_s1] sm:$0xff] }
   0x9   :  { %1271 = vmatpush3.msra.mxu0 %v70_v3  ;;  %1348 = vmatprep.subr.mxu1 %v351_v14  ;;  %v346_v24 = vld [vmem:[%s1918_s3 + $0x40] sm:$0xff]  ;;  %v27_v25 = vld [vmem:[%s1917_s0 + $0x8] sm:$0xff]  ;;  %v345_v26 = vld [vmem:[%s1918_s3 + $0x38] sm:$0xff] }
   0xa   :  { %1272 = vmatprep.subr.mxu0 %v69_v5  ;;  %1349 = vmatpush3.msra.mxu1 %v351_v14  ;;  %v28_v27 = vld [vmem:[%s1917_s0 + $0x10] sm:$0xff]  ;;  %v29_v29 = vld [vmem:[%s1917_s0 + $0x18] sm:$0xff]  ;;  %v343_v30 = vld [vmem:[%s1918_s3 + $0x28] sm:$0xff] }
   0xb   :  { %1273 = vmatpush3.msra.mxu0 %v69_v5  ;;  %1350 = vmatprep.subr.mxu1 %v350_v16  ;;  %v344_v28 = vld [vmem:[%s1918_s3 + $0x30] sm:$0xff]  ;;  %v30_v31 = vld [vmem:[%s1917_s0 + $0x20] sm:$0xff]  ;;  %v31_v33 = vld [vmem:[%s1917_s0 + $0x28] sm:$0xff] }
   0xc   :  { %1274 = vmatprep.subr.mxu0 %v68_v6  ;;  %1351 = vmatpush3.msra.mxu1 %v350_v16  ;;  %v342_v32 = vld [vmem:[%s1918_s3 + $0x20] sm:$0xff]  ;;  %v32_v34 = vld [vmem:[%s1917_s0 + $0x30] sm:$0xff]  ;;  %v33_v35 = vld [vmem:[%s1917_s0 + $0x38] sm:$0xff] }
   0xd   :  { %1275 = vmatpush3.msra.mxu0 %v68_v6  ;;  %1352 = vmatprep.subr.mxu1 %v349_v18  ;;  %v34_v36 = vld [vmem:[%s1917_s0 + $0x40] sm:$0xff]  ;;  %v35_v37 = vld [vmem:[%s1917_s0 + $0x48] sm:$0xff]  ;;  %v36_v38 = vld [vmem:[%s1917_s0 + $0x50] sm:$0xff] }
   0xe   :  { %1276 = vmatprep.subr.mxu0 %v67_v7  ;;  %1353 = vmatpush3.msra.mxu1 %v349_v18  ;;  %v37_v39 = vld [vmem:[%s1917_s0 + $0x58] sm:$0xff]  ;;  %v38_v40 = vld [vmem:[%s1917_s0 + $0x60] sm:$0xff]  ;;  %v39_v41 = vld [vmem:[%s1917_s0 + $0x68] sm:$0xff] }
   0xf   :  { %1277 = vmatpush3.msra.mxu0 %v67_v7  ;;  %1354 = vmatprep.subr.mxu1 %v348_v20  ;;  %v40_v42 = vld [vmem:[%s1917_s0 + $0x70] sm:$0xff]  ;;  %v41_v43 = vld [vmem:[%s1917_s0 + $0x78] sm:$0xff]  ;;  %v42_v44 = vld [vmem:[%s1917_s0 + $0x80] sm:$0xff] }
  0x10   :  { %1278 = vmatprep.subr.mxu0 %v66_v8  ;;  %1355 = vmatpush3.msra.mxu1 %v348_v20  ;;  %v43_v45 = vld [vmem:[%s1917_s0 + $0x88] sm:$0xff]  ;;  %v44_v46 = vld [vmem:[%s1917_s0 + $0x90] sm:$0xff]  ;;  %v45_v47 = vld [vmem:[%s1917_s0 + $0x98] sm:$0xff] }
  0x11   :  { %1279 = vmatpush3.msra.mxu0 %v66_v8  ;;  %1356 = vmatprep.subr.mxu1 %v347_v22  ;;  %v46_v48 = vld [vmem:[%s1917_s0 + $0xa0] sm:$0xff]  ;;  %v47_v49 = vld [vmem:[%s1917_s0 + $0xa8] sm:$0xff]  ;;  %v48_v50 = vld [vmem:[%s1917_s0 + $0xb0] sm:$0xff] }
  0x12   :  { %1280 = vmatprep.subr.mxu0 %v65_v9  ;;  %1357 = vmatpush3.msra.mxu1 %v347_v22  ;;  %v49_v51 = vld [vmem:[%s1917_s0 + $0xb8] sm:$0xff]  ;;  %v50_v52 = vld [vmem:[%s1917_s0 + $0xc0] sm:$0xff]  ;;  %v51_v53 = vld [vmem:[%s1917_s0 + $0xc8] sm:$0xff] }
  0x13   :  { %1281 = vmatpush3.msra.mxu0 %v65_v9  ;;  %1358 = vmatprep.subr.mxu1 %v346_v24  ;;  %v52_v54 = vld [vmem:[%s1917_s0 + $0xd0] sm:$0xff]  ;;  %v53_v55 = vld [vmem:[%s1917_s0 + $0xd8] sm:$0xff]  ;;  %v54_v56 = vld [vmem:[%s1917_s0 + $0xe0] sm:$0xff] }
  0x14   :  { %1282 = vmatprep.subr.mxu0 %v64_v10  ;;  %1359 = vmatpush3.msra.mxu1 %v346_v24  ;;  %v55_v57 = vld [vmem:[%s1917_s0 + $0xe8] sm:$0xff]  ;;  %v56_v58 = vld [vmem:[%s1917_s0 + $0xf0] sm:$0xff]  ;;  %v57_v59 = vld [vmem:[%s1917_s0 + $0xf8] sm:$0xff] }
  0x15   :  { %1283 = vmatpush3.msra.mxu0 %v64_v10  ;;  %1360 = vmatprep.subr.mxu1 %v345_v26  ;;  %v341_v60 = vld [vmem:[%s1918_s3 + $0x18] sm:$0xff]  ;;  %v340_v61 = vld [vmem:[%s1918_s3 + $0x10] sm:$0xff]  ;;  %v339_v62 = vld [vmem:[%s1918_s3 + $0x8] sm:$0xff] }
  0x16   :  { %1284 = vmatprep.subr.mxu0 %v63_v13  ;;  %1361 = vmatpush3.msra.mxu1 %v345_v26  ;;  %v338_v63 = vld [vmem:[%s1918_s3] sm:$0xff] }
  0x17   :  { %1285 = vmatpush3.msra.mxu0 %v63_v13  ;;  %1362 = vmatprep.subr.mxu1 %v344_v28  ;;  %v1167_v0 = vld [vmem:[%s1919_s6] ss:$0 sm:$0xff] }
  0x18   :  { %1286 = vmatprep.subr.mxu0 %v62_v15  ;;  %1363 = vmatpush3.msra.mxu1 %v344_v28  ;;  %v1666_v1 = vld [vmem:[%s1920_s2] ss:$0 sm:$0xff] }
  0x19   :  { %1287 = vmatpush3.msra.mxu0 %v62_v15  ;;  %1364 = vmatprep.subr.mxu1 %v343_v30 }
  0x1a   :  { %1288 = vmatprep.subr.mxu0 %v61_v17  ;;  %1365 = vmatpush3.msra.mxu1 %v343_v30 }
  0x1b   :  { %1289 = vmatpush3.msra.mxu0 %v61_v17  ;;  %1366 = vmatprep.subr.mxu1 %v342_v32 }
  0x1c   :  { %1290 = vmatprep.subr.mxu0 %v60_v19  ;;  %1367 = vmatpush3.msra.mxu1 %v342_v32 }
  0x1d   :  { %1291 = vmatpush3.msra.mxu0 %v60_v19  ;;  %1368 = vmatprep.subr.mxu1 %v341_v60 }
  0x1e   :  { %1292 = vmatprep.subr.mxu0 %v59_v21  ;;  %1369 = vmatpush3.msra.mxu1 %v341_v60 }
  0x1f   :  { %1293 = vmatpush3.msra.mxu0 %v59_v21  ;;  %1370 = vmatprep.subr.mxu1 %v340_v61 }
  0x20   :  { %1294 = vmatprep.subr.mxu0 %v58_v23  ;;  %1371 = vmatpush3.msra.mxu1 %v340_v61 }
  0x21   :  { %1295 = vmatpush3.msra.mxu0 %v58_v23  ;;  %1372 = vmatprep.subr.mxu1 %v339_v62 }
  0x22   :  { %1297 = vmatmul.mubr.f32.vlgmr.msra.gmra.mxu0 %v27_v25  ;;  %1373 = vmatpush3.msra.mxu1 %v339_v62 }
  0x23   :  { %1299 = vmatprep.mubr.f32.mxu0 %v28_v27  ;;  %1374 = vmatprep.subr.mxu1 %v338_v63 }
  0x24   :  { %1375 = vmatpush3.msra.mxu1 %v338_v63  ;;  %732 = vbcast.lane.b32.xlu1 %v1167_v0, 264 }
  0x25   :  { %728 = vbcast.lane.b32.xlu0 %v1167_v0, 256 }
  0x26   :  { %1300 = vmatmul.mubr.f32.gmra.mxu0 %v29_v29 }
  0x27   :  { %1302 = vmatprep.mubr.f32.mxu0 %v30_v31 }
  0x28   :  { %736 = vbcast.lane.b32.xlu1 %v1167_v0, 272 }
  0x29   :  { %744 = vbcast.lane.b32.xlu0 %v1167_v0, 288 }
  0x2a   :  { %1303 = vmatmul.mubr.f32.gmra.mxu0 %v31_v33 }
  0x2b   :  { %1305 = vmatprep.mubr.f32.mxu0 %v32_v34 }
  0x2c   :  { %740 = vbcast.lane.b32.xlu1 %v1167_v0, 280 }
  0x2d   :  { %752 = vbcast.lane.b32.xlu0 %v1167_v0, 304 }
  0x2e   :  { %1306 = vmatmul.mubr.f32.gmra.mxu0 %v33_v35 }
  0x2f   :  { %1308 = vmatprep.mubr.f32.mxu0 %v34_v36 }
  0x30   :  { %748 = vbcast.lane.b32.xlu1 %v1167_v0, 296 }
  0x31   :  { %760 = vbcast.lane.b32.xlu0 %v1167_v0, 320 }
  0x32   :  { %1309 = vmatmul.mubr.f32.gmra.mxu0 %v35_v37 }
  0x33   :  { %1311 = vmatprep.mubr.f32.mxu0 %v36_v38 }
  0x34   :  { %756 = vbcast.lane.b32.xlu1 %v1167_v0, 312 }
  0x35   :  { %768 = vbcast.lane.b32.xlu0 %v1167_v0, 336 }
  0x36   :  { %1312 = vmatmul.mubr.f32.gmra.mxu0 %v37_v39 }
  0x37   :  { %1314 = vmatprep.mubr.f32.mxu0 %v38_v40 }
  0x38   :  { %764 = vbcast.lane.b32.xlu1 %v1167_v0, 328 }
  0x39   :  { %776 = vbcast.lane.b32.xlu0 %v1167_v0, 352 }
  0x3a   :  { %1315 = vmatmul.mubr.f32.gmra.mxu0 %v39_v41 }
  0x3b   :  { %1317 = vmatprep.mubr.f32.mxu0 %v40_v42 }
  0x3c   :  { %772 = vbcast.lane.b32.xlu1 %v1167_v0, 344 }
  0x3d   :  { %784 = vbcast.lane.b32.xlu0 %v1167_v0, 368 }
  0x3e   :  { %1318 = vmatmul.mubr.f32.gmra.mxu0 %v41_v43 }
  0x3f   :  { %1320 = vmatprep.mubr.f32.mxu0 %v42_v44 }
  0x40   :  { %780 = vbcast.lane.b32.xlu1 %v1167_v0, 360 }
  0x42   :  { %1321 = vmatmul.mubr.f32.gmra.mxu0 %v43_v45 }
  0x43   :  { %1323 = vmatprep.mubr.f32.mxu0 %v44_v46 }
  0x44   :  { %788 = vbcast.lane.b32.xlu1 %v1167_v0, 376 }
  0x46   :  { %1324 = vmatmul.mubr.f32.gmra.mxu0 %v45_v47 }
  0x47   :  { %1326 = vmatprep.mubr.f32.mxu0 %v46_v48 }
  0x4a   :  { %1327 = vmatmul.mubr.f32.gmra.mxu0 %v47_v49 }
  0x4b   :  { %1329 = vmatprep.mubr.f32.mxu0 %v48_v50 }
  0x4e   :  { %1330 = vmatmul.mubr.f32.gmra.mxu0 %v49_v51 }
  0x4f   :  { %1332 = vmatprep.mubr.f32.mxu0 %v50_v52 }
  0x52   :  { %1333 = vmatmul.mubr.f32.gmra.mxu0 %v51_v53 }
  0x53   :  { %1335 = vmatprep.mubr.f32.mxu0 %v52_v54 }
  0x56   :  { %1336 = vmatmul.mubr.f32.gmra.mxu0 %v53_v55 }
  0x57   :  { %1338 = vmatprep.mubr.f32.mxu0 %v54_v56 }
  0x5a   :  { %1339 = vmatmul.mubr.f32.gmra.mxu0 %v55_v57 }
  0x5b   :  { %1341 = vmatprep.mubr.f32.mxu0 %v56_v58 }
  0x5e   :  { %1342 = vmatmul.mubr.f32.gmra.mxu0 %v57_v59 }
  0xe2   :  { %v1298_v2 = vpop.f32.mrf.mxu0 }
  0xe3   :  { %v153_v3 = vadd.f32 %v1298_v2, %v1666_v1 }
  0xe4   :  { %v147_v4 = vpop.f32.mrf.mxu0 }
  0xe5   :  { %v148_v5 = vadd.f32 %v1666_v1, %v147_v4  ;;  %v307_v8 = vmax.f32 %v153_v3, 0.0 }
  0xe6   :  { %v1301_v6 = vpop.f32.mrf.mxu0 }
  0xe7   :  { %v306_v7 = vmax.f32 %v148_v5, 0.0  ;;  %v163_v9 = vadd.f32 %v1301_v6, %v1666_v1 }
  0xe8   :  { %v157_v10 = vpop.f32.mrf.mxu0 }
  0xe9   :  { %v158_v11 = vadd.f32 %v1666_v1, %v157_v10  ;;  %1376 = vmatprep.mubr.f32.mxu1 %v306_v7  ;;  %v309_v15 = vmax.f32 %v163_v9, 0.0 }
  0xea   :  { %v1304_v12 = vpop.f32.mrf.mxu0  ;;  %1377 = vmatmul.mubr.f32.vlgmr.msra.gmra.mxu1 %v307_v8 }
  0xeb   :  { %v308_v13 = vmax.f32 %v158_v11, 0.0  ;;  %v173_v14 = vadd.f32 %v1304_v12, %v1666_v1 }
  0xec   :  { %v167_v16 = vpop.f32.mrf.mxu0 }
  0xed   :  { %v168_v17 = vadd.f32 %v1666_v1, %v167_v16  ;;  %1379 = vmatprep.mubr.f32.mxu1 %v308_v13  ;;  %v311_v18 = vmax.f32 %v173_v14, 0.0 }
  0xee   :  { %v1307_v19 = vpop.f32.mrf.mxu0  ;;  %1380 = vmatmul.mubr.f32.gmra.mxu1 %v309_v15 }
  0xef   :  { %v310_v20 = vmax.f32 %v168_v17, 0.0  ;;  %v183_v21 = vadd.f32 %v1307_v19, %v1666_v1 }
  0xf0   :  { %v177_v22 = vpop.f32.mrf.mxu0 }
  0xf1   :  { %v178_v23 = vadd.f32 %v1666_v1, %v177_v22  ;;  %1382 = vmatprep.mubr.f32.mxu1 %v310_v20  ;;  %v313_v24 = vmax.f32 %v183_v21, 0.0 }
  0xf2   :  { %v1310_v25 = vpop.f32.mrf.mxu0  ;;  %1383 = vmatmul.mubr.f32.gmra.mxu1 %v311_v18 }
  0xf3   :  { %v312_v26 = vmax.f32 %v178_v23, 0.0  ;;  %v193_v27 = vadd.f32 %v1310_v25, %v1666_v1 }
  0xf4   :  { %v187_v28 = vpop.f32.mrf.mxu0 }
  0xf5   :  { %v188_v29 = vadd.f32 %v1666_v1, %v187_v28  ;;  %1385 = vmatprep.mubr.f32.mxu1 %v312_v26  ;;  %v315_v30 = vmax.f32 %v193_v27, 0.0 }
  0xf6   :  { %v1313_v31 = vpop.f32.mrf.mxu0  ;;  %1386 = vmatmul.mubr.f32.gmra.mxu1 %v313_v24 }
  0xf7   :  { %v314_v32 = vmax.f32 %v188_v29, 0.0  ;;  %v203_v33 = vadd.f32 %v1313_v31, %v1666_v1 }
  0xf8   :  { %v197_v34 = vpop.f32.mrf.mxu0 }
  0xf9   :  { %v198_v35 = vadd.f32 %v1666_v1, %v197_v34  ;;  %1388 = vmatprep.mubr.f32.mxu1 %v314_v32  ;;  %v317_v36 = vmax.f32 %v203_v33, 0.0 }
  0xfa   :  { %v1316_v37 = vpop.f32.mrf.mxu0  ;;  %1389 = vmatmul.mubr.f32.gmra.mxu1 %v315_v30 }
  0xfb   :  { %v316_v38 = vmax.f32 %v198_v35, 0.0  ;;  %v213_v39 = vadd.f32 %v1316_v37, %v1666_v1  ;;  %v1703_v35 = vld [vmem:[%s1921_s4] ss:$0 sm:$0xff] }
  0xfc   :  { %v207_v40 = vpop.f32.mrf.mxu0 }
  0xfd   :  { %v208_v41 = vadd.f32 %v1666_v1, %v207_v40  ;;  %1391 = vmatprep.mubr.f32.mxu1 %v316_v38  ;;  %v319_v42 = vmax.f32 %v213_v39, 0.0  ;;  %v1709_v39 = vld [vmem:[%s1922_s5] ss:$0 sm:$0xff] }
  0xfe   :  { %v1319_v43 = vpop.f32.mrf.mxu0  ;;  %1392 = vmatmul.mubr.f32.gmra.mxu1 %v317_v36 }
  0xff   :  { %v318_v44 = vmax.f32 %v208_v41, 0.0  ;;  %v223_v45 = vadd.f32 %v1319_v43, %v1666_v1 }
 0x100   :  { %v217_v46 = vpop.f32.mrf.mxu0 }
 0x101   :  { %v218_v47 = vadd.f32 %v1666_v1, %v217_v46  ;;  %1394 = vmatprep.mubr.f32.mxu1 %v318_v44  ;;  %v321_v48 = vmax.f32 %v223_v45, 0.0 }
 0x102   :  { %v1322_v49 = vpop.f32.mrf.mxu0  ;;  %1395 = vmatmul.mubr.f32.gmra.mxu1 %v319_v42 }
 0x103   :  { %v320_v50 = vmax.f32 %v218_v47, 0.0  ;;  %v233_v51 = vadd.f32 %v1322_v49, %v1666_v1 }
 0x104   :  { %v227_v52 = vpop.f32.mrf.mxu0 }
 0x105   :  { %v228_v53 = vadd.f32 %v1666_v1, %v227_v52  ;;  %1397 = vmatprep.mubr.f32.mxu1 %v320_v50  ;;  %v323_v54 = vmax.f32 %v233_v51, 0.0 }
 0x106   :  { %v1325_v55 = vpop.f32.mrf.mxu0  ;;  %1398 = vmatmul.mubr.f32.gmra.mxu1 %v321_v48 }
 0x107   :  { %v322_v56 = vmax.f32 %v228_v53, 0.0  ;;  %v243_v57 = vadd.f32 %v1325_v55, %v1666_v1 }
 0x108   :  { %v237_v58 = vpop.f32.mrf.mxu0 }
 0x109   :  { %v238_v59 = vadd.f32 %v1666_v1, %v237_v58  ;;  %1400 = vmatprep.mubr.f32.mxu1 %v322_v56  ;;  %v325_v60 = vmax.f32 %v243_v57, 0.0 }
 0x10a   :  { %v1328_v61 = vpop.f32.mrf.mxu0  ;;  %1401 = vmatmul.mubr.f32.gmra.mxu1 %v323_v54 }
 0x10b   :  { %v324_v62 = vmax.f32 %v238_v59, 0.0  ;;  %v253_v63 = vadd.f32 %v1328_v61, %v1666_v1 }
 0x10c   :  { %v247_v0 = vpop.f32.mrf.mxu0 }
 0x10d   :  { %v248_v2 = vadd.f32 %v1666_v1, %v247_v0  ;;  %1403 = vmatprep.mubr.f32.mxu1 %v324_v62  ;;  %v327_v3 = vmax.f32 %v253_v63, 0.0 }
 0x10e   :  { %v1331_v4 = vpop.f32.mrf.mxu0  ;;  %1404 = vmatmul.mubr.f32.gmra.mxu1 %v325_v60 }
 0x10f   :  { %v326_v5 = vmax.f32 %v248_v2, 0.0  ;;  %v263_v6 = vadd.f32 %v1331_v4, %v1666_v1 }
 0x110   :  { %v257_v7 = vpop.f32.mrf.mxu0 }
 0x111   :  { %v258_v8 = vadd.f32 %v1666_v1, %v257_v7  ;;  %1406 = vmatprep.mubr.f32.mxu1 %v326_v5  ;;  %v329_v9 = vmax.f32 %v263_v6, 0.0  ;;  %v1427_v6 = vmov 0  }
 0x112   :  { %v1334_v10 = vpop.f32.mrf.mxu0  ;;  %1407 = vmatmul.mubr.f32.gmra.mxu1 %v327_v3  ;;  %1425 = vset.pattern.permute.xlu1 %v1427_v6 }
 0x113   :  { %v328_v11 = vmax.f32 %v258_v8, 0.0  ;;  %v273_v12 = vadd.f32 %v1334_v10, %v1666_v1  ;;  %1426 = vset.pattern.permute.xlu0 %v1427_v6 }
 0x114   :  { %v267_v13 = vpop.f32.mrf.mxu0 }
 0x115   :  { %v268_v14 = vadd.f32 %v1666_v1, %v267_v13  ;;  %1409 = vmatprep.mubr.f32.mxu1 %v328_v11  ;;  %v331_v15 = vmax.f32 %v273_v12, 0.0 }
 0x116   :  { %v1337_v16 = vpop.f32.mrf.mxu0  ;;  %1410 = vmatmul.mubr.f32.gmra.mxu1 %v329_v9 }
 0x117   :  { %v330_v17 = vmax.f32 %v268_v14, 0.0  ;;  %v283_v18 = vadd.f32 %v1337_v16, %v1666_v1 }
 0x118   :  { %v277_v19 = vpop.f32.mrf.mxu0 }
 0x119   :  { %v278_v20 = vadd.f32 %v1666_v1, %v277_v19  ;;  %1412 = vmatprep.mubr.f32.mxu1 %v330_v17  ;;  %v333_v21 = vmax.f32 %v283_v18, 0.0 }
 0x11a   :  { %v1340_v22 = vpop.f32.mrf.mxu0  ;;  %1413 = vmatmul.mubr.f32.gmra.mxu1 %v331_v15 }
 0x11b   :  { %v332_v23 = vmax.f32 %v278_v20, 0.0  ;;  %v293_v24 = vadd.f32 %v1340_v22, %v1666_v1 }
 0x11c   :  { %v287_v25 = vpop.f32.mrf.mxu0 }
 0x11d   :  { %v288_v26 = vadd.f32 %v1666_v1, %v287_v25  ;;  %1415 = vmatprep.mubr.f32.mxu1 %v332_v23  ;;  %v335_v27 = vmax.f32 %v293_v24, 0.0 }
 0x11e   :  { %v1343_v28 = vpop.f32.mrf.mxu0  ;;  %1416 = vmatmul.mubr.f32.gmra.mxu1 %v333_v21 }
 0x11f   :  { %v334_v29 = vmax.f32 %v288_v26, 0.0  ;;  %v303_v30 = vadd.f32 %v1343_v28, %v1666_v1 }
 0x120   :  { %v297_v31 = vpop.f32.mrf.mxu0 }
 0x121   :  { %v298_v32 = vadd.f32 %v1666_v1, %v297_v31  ;;  %1418 = vmatprep.mubr.f32.mxu1 %v334_v29  ;;  %v337_v33 = vmax.f32 %v303_v30, 0.0 }
 0x122   :  { %1419 = vmatmul.mubr.f32.gmra.mxu1 %v335_v27 }
 0x123   :  { %v336_v34 = vmax.f32 %v298_v32, 0.0 }
 0x125   :  { %1421 = vmatprep.mubr.f32.mxu1 %v336_v34 }
 0x126   :  { %1422 = vmatmul.mubr.f32.gmra.mxu1 %v337_v33 }
 0x1aa   :  { %v1378_v36 = vpop.f32.mrf.mxu1 }
 0x1ab   :  { %v433_v37 = vadd.f32 %v1378_v36, %v1703_v35 }
 0x1ac   :  { %v427_v38 = vpop.f32.mrf.mxu1 }
 0x1ad   :  { %v587_v1 = vmax.f32 %v433_v37, 0.0  ;;  %v428_v40 = vadd.f32 %v1703_v35, %v427_v38 }
 0x1ae   :  { %v1381_v41 = vpop.f32.mrf.mxu1 }
 0x1af   :  { %v586_v42 = vmax.f32 %v428_v40, 0.0  ;;  %v443_v43 = vadd.f32 %v1381_v41, %v1703_v35  ;;  %v627_v44 = vmul.f32 %v1709_v39, %v587_v1 }
 0x1b0   :  { %v437_v45 = vpop.f32.mrf.mxu1 }
 0x1b1   :  { %v589_v46 = vmax.f32 %v443_v43, 0.0  ;;  %v438_v47 = vadd.f32 %v1703_v35, %v437_v45  ;;  %660 = vadd.xlane.f32.xlu0 %v627_v44  ;;  %v626_v52 = vmul.f32 %v1709_v39, %v586_v42 }
 0x1b2   :  { %v1384_v48 = vpop.f32.mrf.mxu1 }
 0x1b3   :  { %v588_v49 = vmax.f32 %v438_v47, 0.0  ;;  %v453_v50 = vadd.f32 %v1384_v48, %v1703_v35  ;;  %v629_v51 = vmul.f32 %v1709_v39, %v589_v46 }
 0x1b4   :  { %v447_v53 = vpop.f32.mrf.mxu1 }
 0x1b5   :  { %v448_v54 = vadd.f32 %v1703_v35, %v447_v53  ;;  %664 = vadd.xlane.f32.xlu1 %v629_v51  ;;  %658 = vadd.xlane.f32.xlu0 %v626_v52  ;;  %v591_v55 = vmax.f32 %v453_v50, 0.0  ;;  %v628_v59 = vmul.f32 %v1709_v39, %v588_v49 }
 0x1b6   :  { %v1387_v56 = vpop.f32.mrf.mxu1 }
 0x1b7   :  { %v590_v57 = vmax.f32 %v448_v54, 0.0  ;;  %v463_v58 = vadd.f32 %v1387_v56, %v1703_v35  ;;  %v631_v0 = vmul.f32 %v1709_v39, %v591_v55 }
 0x1b8   :  { %v457_v60 = vpop.f32.mrf.mxu1 }
 0x1b9   :  { %v458_v61 = vadd.f32 %v1703_v35, %v457_v60  ;;  %662 = vadd.xlane.f32.xlu1 %v628_v59  ;;  %v630_v62 = vmul.f32 %v1709_v39, %v590_v57  ;;  %v593_v2 = vmax.f32 %v463_v58, 0.0 }
 0x1ba   :  { %v1390_v63 = vpop.f32.mrf.mxu1 }
 0x1bb   :  { %v592_v3 = vmax.f32 %v458_v61, 0.0  ;;  %v473_v4 = vadd.f32 %v1390_v63, %v1703_v35  ;;  %666 = vadd.xlane.f32.xlu0 %v630_v62  ;;  %v633_v13 = vmul.f32 %v1709_v39, %v593_v2 }
 0x1bc   :  { %v467_v5 = vpop.f32.mrf.mxu1 }
 0x1bd   :  { %v468_v7 = vadd.f32 %v1703_v35, %v467_v5  ;;  %668 = vadd.xlane.f32.xlu1 %v631_v0  ;;  %v632_v8 = vmul.f32 %v1709_v39, %v592_v3  ;;  %v595_v10 = vmax.f32 %v473_v4, 0.0 }
 0x1be   :  { %v1393_v9 = vpop.f32.mrf.mxu1 }
 0x1bf   :  { %v594_v11 = vmax.f32 %v468_v7, 0.0  ;;  %v483_v12 = vadd.f32 %v1393_v9, %v1703_v35  ;;  %670 = vadd.xlane.f32.xlu0 %v632_v8  ;;  %v635_v21 = vmul.f32 %v1709_v39, %v595_v10 }
 0x1c0   :  { %v477_v14 = vpop.f32.mrf.mxu1 }
 0x1c1   :  { %v478_v15 = vadd.f32 %v1703_v35, %v477_v14  ;;  %672 = vadd.xlane.f32.xlu1 %v633_v13  ;;  %v634_v16 = vmul.f32 %v1709_v39, %v594_v11  ;;  %v597_v18 = vmax.f32 %v483_v12, 0.0 }
 0x1c2   :  { %v1396_v17 = vpop.f32.mrf.mxu1 }
 0x1c3   :  { %v596_v19 = vmax.f32 %v478_v15, 0.0  ;;  %v493_v20 = vadd.f32 %v1396_v17, %v1703_v35  ;;  %674 = vadd.xlane.f32.xlu0 %v634_v16  ;;  %v637_v29 = vmul.f32 %v1709_v39, %v597_v18 }
 0x1c4   :  { %v487_v22 = vpop.f32.mrf.mxu1 }
 0x1c5   :  { %v488_v23 = vadd.f32 %v1703_v35, %v487_v22  ;;  %676 = vadd.xlane.f32.xlu1 %v635_v21  ;;  %v636_v24 = vmul.f32 %v1709_v39, %v596_v19  ;;  %v599_v26 = vmax.f32 %v493_v20, 0.0 }
 0x1c6   :  { %v1399_v25 = vpop.f32.mrf.mxu1 }
 0x1c7   :  { %v598_v27 = vmax.f32 %v488_v23, 0.0  ;;  %v503_v28 = vadd.f32 %v1399_v25, %v1703_v35  ;;  %678 = vadd.xlane.f32.xlu0 %v636_v24  ;;  %v639_v38 = vmul.f32 %v1709_v39, %v599_v26 }
 0x1c8   :  { %v497_v30 = vpop.f32.mrf.mxu1 }
 0x1c9   :  { %v498_v31 = vadd.f32 %v1703_v35, %v497_v30  ;;  %680 = vadd.xlane.f32.xlu1 %v637_v29  ;;  %v638_v32 = vmul.f32 %v1709_v39, %v598_v27  ;;  %v601_v34 = vmax.f32 %v503_v28, 0.0 }
 0x1ca   :  { %v1402_v33 = vpop.f32.mrf.mxu1 }
 0x1cb   :  { %v600_v36 = vmax.f32 %v498_v31, 0.0  ;;  %v513_v37 = vadd.f32 %v1402_v33, %v1703_v35  ;;  %682 = vadd.xlane.f32.xlu0 %v638_v32  ;;  %v641_v46 = vmul.f32 %v1709_v39, %v601_v34 }
 0x1cc   :  { %v507_v1 = vpop.f32.mrf.mxu1 }
 0x1cd   :  { %v508_v40 = vadd.f32 %v1703_v35, %v507_v1  ;;  %684 = vadd.xlane.f32.xlu1 %v639_v38  ;;  %v640_v41 = vmul.f32 %v1709_v39, %v600_v36  ;;  %v603_v43 = vmax.f32 %v513_v37, 0.0 }
 0x1ce   :  { %v1405_v42 = vpop.f32.mrf.mxu1 }
 0x1cf   :  { %v602_v44 = vmax.f32 %v508_v40, 0.0  ;;  %v523_v45 = vadd.f32 %v1405_v42, %v1703_v35  ;;  %686 = vadd.xlane.f32.xlu0 %v640_v41  ;;  %v643_v54 = vmul.f32 %v1709_v39, %v603_v43  ;;  %v1774_v41 = vpop.permute.xlu1 %732  ;;  %v729_v43 = vpop.permute.xlu0 %728 }
 0x1d0   :  { %v517_v47 = vpop.f32.mrf.mxu1 }
 0x1d1   :  { %v518_v48 = vadd.f32 %v1703_v35, %v517_v47  ;;  %688 = vadd.xlane.f32.xlu1 %v641_v46  ;;  %v642_v49 = vmul.f32 %v1709_v39, %v602_v44  ;;  %v605_v51 = vmax.f32 %v523_v45, 0.0 }
 0x1d2   :  { %v1408_v50 = vpop.f32.mrf.mxu1 }
 0x1d3   :  { %v604_v52 = vmax.f32 %v518_v48, 0.0  ;;  %v533_v53 = vadd.f32 %v1408_v50, %v1703_v35  ;;  %690 = vadd.xlane.f32.xlu0 %v642_v49  ;;  %v645_v62 = vmul.f32 %v1709_v39, %v605_v51  ;;  %v1776_v42 = vpop.permute.xlu1 %736  ;;  %v1780_v44 = vpop.permute.xlu0 %744 }
 0x1d4   :  { %v527_v55 = vpop.f32.mrf.mxu1 }
 0x1d5   :  { %v528_v56 = vadd.f32 %v1703_v35, %v527_v55  ;;  %692 = vadd.xlane.f32.xlu1 %v643_v54  ;;  %v644_v57 = vmul.f32 %v1709_v39, %v604_v52  ;;  %v607_v59 = vmax.f32 %v533_v53, 0.0 }
 0x1d6   :  { %v1411_v58 = vpop.f32.mrf.mxu1 }
 0x1d7   :  { %v606_v60 = vmax.f32 %v528_v56, 0.0  ;;  %v543_v61 = vadd.f32 %v1411_v58, %v1703_v35  ;;  %694 = vadd.xlane.f32.xlu0 %v644_v57  ;;  %v647_v7 = vmul.f32 %v1709_v39, %v607_v59  ;;  %v1784_v46 = vpop.permute.xlu0 %752 }
 0x1d8   :  { %v537_v63 = vpop.f32.mrf.mxu1 }
 0x1d9   :  { %v538_v0 = vadd.f32 %v1703_v35, %v537_v63  ;;  %696 = vadd.xlane.f32.xlu1 %v645_v62  ;;  %v646_v2 = vmul.f32 %v1709_v39, %v606_v60  ;;  %v609_v4 = vmax.f32 %v543_v61, 0.0 }
 0x1da   :  { %v1414_v3 = vpop.f32.mrf.mxu1 }
 0x1db   :  { %v608_v5 = vmax.f32 %v538_v0, 0.0  ;;  %v553_v6 = vadd.f32 %v1414_v3, %v1703_v35  ;;  %698 = vadd.xlane.f32.xlu0 %v646_v2  ;;  %v649_v15 = vmul.f32 %v1709_v39, %v609_v4  ;;  %v1788_v48 = vpop.permute.xlu0 %760 }
 0x1dc   :  { %v547_v8 = vpop.f32.mrf.mxu1 }
 0x1dd   :  { %v548_v9 = vadd.f32 %v1703_v35, %v547_v8  ;;  %700 = vadd.xlane.f32.xlu1 %v647_v7  ;;  %v648_v10 = vmul.f32 %v1709_v39, %v608_v5  ;;  %v611_v12 = vmax.f32 %v553_v6, 0.0 }
 0x1de   :  { %v1417_v11 = vpop.f32.mrf.mxu1 }
 0x1df   :  { %v610_v13 = vmax.f32 %v548_v9, 0.0  ;;  %v563_v14 = vadd.f32 %v1417_v11, %v1703_v35  ;;  %702 = vadd.xlane.f32.xlu0 %v648_v10  ;;  %v651_v23 = vmul.f32 %v1709_v39, %v611_v12  ;;  %v1792_v49 = vpop.permute.xlu0 %768 }
 0x1e0   :  { %v557_v16 = vpop.f32.mrf.mxu1 }
 0x1e1   :  { %v558_v17 = vadd.f32 %v1703_v35, %v557_v16  ;;  %704 = vadd.xlane.f32.xlu1 %v649_v15  ;;  %v650_v18 = vmul.f32 %v1709_v39, %v610_v13  ;;  %v613_v20 = vmax.f32 %v563_v14, 0.0 }
 0x1e2   :  { %v1420_v19 = vpop.f32.mrf.mxu1 }
 0x1e3   :  { %v612_v21 = vmax.f32 %v558_v17, 0.0  ;;  %v573_v22 = vadd.f32 %v1420_v19, %v1703_v35  ;;  %706 = vadd.xlane.f32.xlu0 %v650_v18  ;;  %v653_v31 = vmul.f32 %v1709_v39, %v613_v20  ;;  %v1796_v51 = vpop.permute.xlu0 %776 }
 0x1e4   :  { %v567_v24 = vpop.f32.mrf.mxu1 }
 0x1e5   :  { %v568_v25 = vadd.f32 %v1703_v35, %v567_v24  ;;  %708 = vadd.xlane.f32.xlu1 %v651_v23  ;;  %v652_v26 = vmul.f32 %v1709_v39, %v612_v21  ;;  %v615_v28 = vmax.f32 %v573_v22, 0.0 }
 0x1e6   :  { %v1423_v27 = vpop.f32.mrf.mxu1 }
 0x1e7   :  { %v614_v29 = vmax.f32 %v568_v25, 0.0  ;;  %v583_v30 = vadd.f32 %v1423_v27, %v1703_v35  ;;  %710 = vadd.xlane.f32.xlu0 %v652_v26  ;;  %v655_v38 = vmul.f32 %v1709_v39, %v615_v28  ;;  %v1800_v53 = vpop.permute.xlu0 %784 }
 0x1e8   :  { %v577_v32 = vpop.f32.mrf.mxu1 }
 0x1e9   :  { %v617_v33 = vmax.f32 %v583_v30, 0.0  ;;  %v578_v34 = vadd.f32 %v1703_v35, %v577_v32  ;;  %712 = vadd.xlane.f32.xlu1 %v653_v31  ;;  %v654_v36 = vmul.f32 %v1709_v39, %v614_v29  ;;  %v1778_v35 = vpop.permute.xlu1 %740 }
 0x1eb   :  { %v616_v37 = vmax.f32 %v578_v34, 0.0  ;;  %714 = vadd.xlane.f32.xlu0 %v654_v36  ;;  %v657_v1 = vmul.f32 %v1709_v39, %v617_v33 }
 0x1ed   :  { %716 = vadd.xlane.f32.xlu1 %v655_v38  ;;  %v656_v40 = vmul.f32 %v1709_v39, %v616_v37  ;;  %v1782_v45 = vpop.permute.xlu1 %748 }
 0x1ef   :  { %718 = vadd.xlane.f32.xlu0 %v656_v40 }
 0x1f1   :  { %720 = vadd.xlane.f32.xlu1 %v657_v1  ;;  %v1786_v47 = vpop.permute.xlu1 %756 }
 0x1f5   :  { %v1790_v39 = vpop.permute.xlu1 %764 }
 0x1f9   :  { %v1794_v50 = vpop.permute.xlu1 %772 }
 0x1fd   :  { %v1798_v52 = vpop.permute.xlu1 %780 }
 0x201   :  { %v1802_v54 = vpop.permute.xlu1 %788 }
 0x23a   :  { %v661_v55 = vpop.xlane.xlu0 %660 }
 0x23b   :  { %v807_v56 = vadd.f32 %v1774_v41, %v661_v55 }
 0x23d   :  { %874 = vperm.xlu1 %1425, %v807_v56  }
 0x23e   :  { %v665_v57 = vpop.xlane.xlu1 %664  ;;  %v659_v58 = vpop.xlane.xlu0 %658 }
 0x23f   :  { %v806_v59 = vadd.f32 %v729_v43, %v659_v58  ;;  %v809_v61 = vadd.f32 %v1778_v35, %v665_v57 }
 0x241   :  { %871 = vperm.xlu0 %1426, %v806_v59  }
 0x242   :  { %v663_v60 = vpop.xlane.xlu1 %662 }
 0x243   :  { %v808_v62 = vadd.f32 %v1776_v42, %v663_v60 }
 0x244   :  { %v667_v63 = vpop.xlane.xlu0 %666 }
 0x245   :  { %877 = vperm.xlu1 %1425, %v808_v62   ;;  %880 = vperm.xlu0 %1426, %v809_v61   ;;  %v810_v2 = vadd.f32 %v1780_v44, %v667_v63 }
 0x246   :  { %v669_v0 = vpop.xlane.xlu1 %668 }
 0x247   :  { %v811_v3 = vadd.f32 %v1782_v45, %v669_v0 }
 0x248   :  { %v671_v4 = vpop.xlane.xlu0 %670 }
 0x249   :  { %886 = vperm.xlu0 %1426, %v811_v3   ;;  %883 = vperm.xlu1 %1425, %v810_v2   ;;  %v812_v6 = vadd.f32 %v1784_v46, %v671_v4  ;;  %v966_v4 = vlaneseq }
 0x24a   :  { %v673_v5 = vpop.xlane.xlu1 %672 }
 0x24b   :  { %v813_v7 = vadd.f32 %v1786_v47, %v673_v5 }
 0x24c   :  { %v675_v8 = vpop.xlane.xlu0 %674 }
 0x24d   :  { %892 = vperm.xlu0 %1426, %v813_v7   ;;  %889 = vperm.xlu1 %1425, %v812_v6   ;;  %v814_v10 = vadd.f32 %v1788_v48, %v675_v8  ;;  %v1856_v7 = vand.u32 127, %v966_v4 }
 0x24e   :  { %v677_v9 = vpop.xlane.xlu1 %676 }
 0x24f   :  { %v815_v11 = vadd.f32 %v1790_v39, %v677_v9 }
 0x250   :  { %v679_v12 = vpop.xlane.xlu0 %678 }
 0x251   :  { %898 = vperm.xlu0 %1426, %v815_v11   ;;  %895 = vperm.xlu1 %1425, %v814_v10   ;;  %v816_v14 = vadd.f32 %v1792_v49, %v679_v12  ;;  %v979_v10 = vadd.s32 4294967280, %v1856_v7  ;;  %v1859_v11 = vshrl.u32 %v966_v4, 7  ;;  %v972_v12 = vadd.s32 4294967288, %v1856_v7 }
 0x252   :  { %v681_v13 = vpop.xlane.xlu1 %680 }
 0x253   :  { %v817_v15 = vadd.f32 %v1794_v50, %v681_v13 }
 0x254   :  { %v683_v16 = vpop.xlane.xlu0 %682 }
 0x255   :  { %904 = vperm.xlu0 %1426, %v817_v15   ;;  %901 = vperm.xlu1 %1425, %v816_v14   ;;  %v818_v21 = vadd.f32 %v1796_v51, %v683_v16  ;;  %v970_v15 = vsub.s32 %v1856_v7, %v1859_v11  ;;  %v986_v16 = vadd.s32 4294967272, %v1856_v7 }
 0x256   :  { %v685_v17 = vpop.xlane.xlu1 %684 }
 0x257   :  { %v819_v18 = vadd.f32 %v1798_v52, %v685_v17  ;;  %v982_v17 = vsub.s32 %v979_v10, %v1859_v11 }
 0x258   :  { %v687_v19 = vpop.xlane.xlu0 %686 }
 0x259   :  { %910 = vperm.xlu1 %1425, %v819_v18   ;;  %v820_v55 = vadd.f32 %v1800_v53, %v687_v19  ;;  %v993_v18 = vadd.s32 4294967264, %v1856_v7  ;;  %v975_v19 = vsub.s32 %v972_v12, %v1859_v11 }
 0x25a   :  { %v689_v20 = vpop.xlane.xlu1 %688 }
 0x25c   :  { %v691_v22 = vpop.xlane.xlu0 %690 }
 0x25d   :  { %907 = vperm.xlu1 %1425, %v818_v21   ;;  %v822_v24 = vadd.f32 %v729_v43, %v691_v22  ;;  %v1007_v21 = vadd.s32 4294967248, %v1856_v7 }
 0x25e   :  { %v693_v23 = vpop.xlane.xlu1 %692 }
 0x25f   :  { %v823_v25 = vadd.f32 %v1774_v41, %v693_v23 }
 0x260   :  { %v695_v26 = vpop.xlane.xlu0 %694 }
 0x261   :  { %922 = vperm.xlu0 %1426, %v823_v25   ;;  %919 = vperm.xlu1 %1425, %v822_v24   ;;  %v824_v28 = vadd.f32 %v1776_v42, %v695_v26  ;;  %v989_v25 = vsub.s32 %v986_v16, %v1859_v11 }
 0x262   :  { %v697_v27 = vpop.xlane.xlu1 %696 }
 0x263   :  { %v825_v29 = vadd.f32 %v1778_v35, %v697_v27 }
 0x264   :  { %v699_v30 = vpop.xlane.xlu0 %698 }
 0x265   :  { %928 = vperm.xlu0 %1426, %v825_v29   ;;  %925 = vperm.xlu1 %1425, %v824_v28   ;;  %v826_v32 = vadd.f32 %v1780_v44, %v699_v30  ;;  %v996_v29 = vsub.s32 %v993_v18, %v1859_v11 }
 0x266   :  { %v701_v31 = vpop.xlane.xlu1 %700 }
 0x267   :  { %v827_v33 = vadd.f32 %v1782_v45, %v701_v31 }
 0x268   :  { %v703_v34 = vpop.xlane.xlu0 %702 }
 0x269   :  { %934 = vperm.xlu0 %1426, %v827_v33   ;;  %931 = vperm.xlu1 %1425, %v826_v32   ;;  %v828_v37 = vadd.f32 %v1784_v46, %v703_v34  ;;  %v1010_v33 = vsub.s32 %v1007_v21, %v1859_v11  ;;  %v1014_v34 = vadd.s32 4294967240, %v1856_v7  ;;  %v1063_v21 = vadd.s32 4294967184, %v1856_v7 }
 0x26a   :  { %v705_v36 = vpop.xlane.xlu1 %704 }
 0x26b   :  { %v829_v38 = vadd.f32 %v1786_v47, %v705_v36  ;;  %v1021_v36 = vadd.s32 4294967232, %v1856_v7 }
 0x26c   :  { %v707_v1 = vpop.xlane.xlu0 %706 }
 0x26d   :  { %940 = vperm.xlu0 %1426, %v829_v38   ;;  %937 = vperm.xlu1 %1425, %v828_v37   ;;  %v830_v41 = vadd.f32 %v1788_v48, %v707_v1  ;;  %v821_v48 = vadd.f32 %v1802_v54, %v689_v20  ;;  %v1000_v20 = vadd.s32 4294967256, %v1856_v7 }
 0x26e   :  { %v709_v40 = vpop.xlane.xlu1 %708 }
 0x26f   :  { %v831_v42 = vadd.f32 %v1790_v39, %v709_v40  ;;  %v1003_v32 = vsub.s32 %v1000_v20, %v1859_v11 }
 0x270   :  { %v711_v43 = vpop.xlane.xlu0 %710 }
 0x271   :  { %946 = vperm.xlu0 %1426, %v831_v42   ;;  %943 = vperm.xlu1 %1425, %v830_v41   ;;  %v832_v44 = vadd.f32 %v1792_v49, %v711_v43 }
 0x272   :  { %v713_v35 = vpop.xlane.xlu1 %712 }
 0x273   :  { %v833_v45 = vadd.f32 %v1794_v50, %v713_v35 }
 0x274   :  { %v715_v46 = vpop.xlane.xlu0 %714 }
 0x275   :  { %952 = vperm.xlu0 %1426, %v833_v45   ;;  %949 = vperm.xlu1 %1425, %v832_v44   ;;  %v834_v39 = vadd.f32 %v1796_v51, %v715_v46  ;;  %v1017_v46 = vsub.s32 %v1014_v34, %v1859_v11 }
 0x276   :  { %v717_v47 = vpop.xlane.xlu1 %716 }
 0x277   :  { %v835_v56 = vadd.f32 %v1798_v52, %v717_v47  ;;  %v1024_v47 = vsub.s32 %v1021_v36, %v1859_v11 }
 0x278   :  { %v719_v57 = vpop.xlane.xlu0 %718 }
 0x279   :  { %958 = vperm.xlu0 %1426, %v835_v56   ;;  %913 = vperm.xlu1 %1425, %v820_v55   ;;  %v836_v49 = vadd.f32 %v1800_v53, %v719_v57  ;;  %v1028_v55 = vadd.s32 4294967224, %v1856_v7  ;;  %v1035_v56 = vadd.s32 4294967216, %v1856_v7 }
 0x27a   :  { %v721_v50 = vpop.xlane.xlu1 %720 }
 0x27b   :  { %v837_v58 = vadd.f32 %v1802_v54, %v721_v50  ;;  %v1038_v4 = vsub.s32 %v1035_v56, %v1859_v11 }
 0x27d   :  { %916 = vperm.xlu1 %1425, %v821_v48   ;;  %955 = vperm.xlu0 %1426, %v834_v39  }
 0x281   :  { %961 = vperm.xlu0 %1426, %v836_v49  }
 0x285   :  { %964 = vperm.xlu0 %1426, %v837_v58  }
 0x2b8   :  { %v875_v59 = vpop.permute.xlu1 %874 }
 0x2b9   :  { %v976_v31 = vrot.slane %v875_v59, %v975_v19 }
 0x2bc   :  { %v872_v60 = vpop.permute.xlu0 %871 }
 0x2bd   :  { %v971_v24 = vrot.slane %v872_v60, %v970_v15 }
 0x2bf   :  { %v978_v1 = vsel %vm977_vm0, %v976_v31, %v971_v24  ;;  %v1070_v31 = vadd.s32 4294967176, %v1856_v7 }
 0x2c0   :  { %v878_v61 = vpop.permute.xlu1 %877  ;;  %v1834_v52 = vpop.permute.xlu0 %880 }
 0x2c1   :  { %v983_v28 = vrot.slane %v878_v61, %v982_v17  ;;  %v990_v40 = vrot.slane %v1834_v52, %v989_v25 }
 0x2c3   :  { %v985_v43 = vsel %vm984_vm1, %v983_v28, %v978_v1 }
 0x2c4   :  { %v1836_v62 = vpop.permute.xlu1 %883  ;;  %v1838_v63 = vpop.permute.xlu0 %886  ;;  %v992_v57 = vsel %vm991_vm2, %v990_v40, %v985_v43 }
 0x2c5   :  { %v997_v35 = vrot.slane %v1836_v62, %v996_v29  ;;  %v1004_v49 = vrot.slane %v1838_v63, %v1003_v32  ;;  %v1031_v62 = vsub.s32 %v1028_v55, %v1859_v11 }
 0x2c7   :  { %v999_v59 = vsel %vm998_vm3, %v997_v35, %v992_v57 }
 0x2c8   :  { %v1840_v51 = vpop.permute.xlu1 %889  ;;  %v1842_v0 = vpop.permute.xlu0 %892  ;;  %v1006_v12 = vsel %vm1005_vm4, %v1004_v49, %v999_v59 }
 0x2c9   :  { %v1011_v60 = vrot.slane %v1840_v51, %v1010_v33 }
 0x2cc   :  { %v1844_v2 = vpop.permute.xlu1 %895  ;;  %v1848_v3 = vpop.permute.xlu0 %898 }
 0x2cd   :  { %v1025_v16 = vrot.slane %v1844_v2, %v1024_v47 }
 0x2d0   :  { %v1846_v53 = vpop.permute.xlu1 %901  ;;  %v1852_v5 = vpop.permute.xlu0 %904 }
 0x2d1   :  { %v1039_v2 = vrot.slane %v1846_v53, %v1038_v4 }
 0x2d4   :  { %v1850_v54 = vpop.permute.xlu1 %910 }
 0x2d8   :  { %v1854_v6 = vpop.permute.xlu1 %907 }
 0x2dc   :  { %v920_v8 = vpop.permute.xlu1 %919  ;;  %v923_v9 = vpop.permute.xlu0 %922 }
 0x2dd   :  { %v1080_v26 = vrot.slane %v920_v8, %v970_v15  ;;  %v1084_v27 = vrot.slane %v923_v9, %v975_v19  ;;  %v1042_v8 = vadd.s32 4294967208, %v1856_v7  ;;  %v1049_v9 = vadd.s32 4294967200, %v1856_v7 }
 0x2de   :  { %v1013_v15 = vsel %vm1012_vm5, %v1011_v60, %v1006_v12 }
 0x2df   :  { %v1085_v41 = vsel %vm977_vm0, %v1084_v27, %v1080_v26  ;;  %v1045_v19 = vsub.s32 %v1042_v8, %v1859_v11  ;;  %v1052_v20 = vsub.s32 %v1049_v9, %v1859_v11 }
 0x2e0   :  { %v926_v13 = vpop.permute.xlu1 %925  ;;  %v929_v14 = vpop.permute.xlu0 %928 }
 0x2e1   :  { %v1089_v30 = vrot.slane %v926_v13, %v982_v17  ;;  %v1094_v42 = vrot.slane %v929_v14, %v989_v25  ;;  %v1018_v13 = vrot.slane %v1842_v0, %v1017_v46  ;;  %v1032_v0 = vrot.slane %v1848_v3, %v1031_v62 }
 0x2e2   :  { %v1046_v34 = vrot.slane %v1852_v5, %v1045_v19 }
 0x2e3   :  { %v1090_v44 = vsel %vm984_vm1, %v1089_v30, %v1085_v41  ;;  %v1056_v30 = vadd.s32 4294967192, %v1856_v7  ;;  %v1073_v7 = vsub.s32 %v1070_v31, %v1859_v11 }
 0x2e4   :  { %v932_v22 = vpop.permute.xlu1 %931  ;;  %v935_v23 = vpop.permute.xlu0 %934  ;;  %v1095_v50 = vsel %vm991_vm2, %v1094_v42, %v1090_v44 }
 0x2e5   :  { %v1099_v45 = vrot.slane %v932_v22, %v996_v29  ;;  %v1104_v58 = vrot.slane %v935_v23, %v1003_v32  ;;  %v1020_v23 = vsel %vm1019_vm6, %v1018_v13, %v1013_v15  ;;  %v1066_v32 = vsub.s32 %v1063_v21, %v1859_v11 }
 0x2e6   :  { %v1027_v26 = vsel %vm1026_vm7, %v1025_v16, %v1020_v23  ;;  %v1059_v41 = vsub.s32 %v1056_v30, %v1859_v11 }
 0x2e7   :  { %v1100_v61 = vsel %vm998_vm3, %v1099_v45, %v1095_v50  ;;  %v1034_v3 = vsel %vm1033_vm8, %v1032_v0, %v1027_v26 }
 0x2e8   :  { %v938_v37 = vpop.permute.xlu1 %937  ;;  %v941_v38 = vpop.permute.xlu0 %940  ;;  %v1105_v51 = vsel %vm1005_vm4, %v1104_v58, %v1100_v61  ;;  %v1041_v53 = vsel %vm1040_vm9, %v1039_v2, %v1034_v3 }
 0x2e9   :  { %v1109_v52 = vrot.slane %v938_v37, %v1010_v33  ;;  %v1114_v14 = vrot.slane %v941_v38, %v1017_v46  ;;  %v1053_v38 = vrot.slane %v1854_v6, %v1052_v20  ;;  %v1048_v35 = vsel %vm1047_vm10, %v1046_v34, %v1041_v53 }
 0x2ea   :  { %v1060_v6 = vrot.slane %v1850_v54, %v1059_v41 }
 0x2eb   :  { %v1110_v17 = vsel %vm1012_vm5, %v1109_v52, %v1105_v51  ;;  %v1055_v5 = vsel %vm1054_vm11, %v1053_v38, %v1048_v35 }
 0x2ec   :  { %v944_v48 = vpop.permute.xlu1 %943  ;;  %v947_v39 = vpop.permute.xlu0 %946  ;;  %v1115_v24 = vsel %vm1019_vm6, %v1114_v14, %v1110_v17 }
 0x2ed   :  { %v1119_v18 = vrot.slane %v944_v48, %v1024_v47  ;;  %v1124_v25 = vrot.slane %v947_v39, %v1031_v62  ;;  %v1062_v39 = vsel %vm1061_vm12, %v1060_v6, %v1055_v5 }
 0x2ef   :  { %v1120_v27 = vsel %vm1026_vm7, %v1119_v18, %v1115_v24 }
 0x2f0   :  { %v950_v10 = vpop.permute.xlu1 %949  ;;  %v953_v63 = vpop.permute.xlu0 %952  ;;  %v1125_v36 = vsel %vm1033_vm8, %v1124_v25, %v1120_v27 }
 0x2f1   :  { %v1129_v28 = vrot.slane %v950_v10, %v1038_v4  ;;  %v1134_v37 = vrot.slane %v953_v63, %v1045_v19 }
 0x2f3   :  { %v1130_v1 = vsel %vm1040_vm9, %v1129_v28, %v1125_v36 }
 0x2f4   :  { %v959_v22 = vpop.permute.xlu0 %958  ;;  %v914_v29 = vpop.permute.xlu1 %913  ;;  %v1135_v44 = vsel %vm1047_vm10, %v1134_v37, %v1130_v1 }
 0x2f5   :  { %v1067_v45 = vrot.slane %v914_v29, %v1066_v32  ;;  %v1144_v55 = vrot.slane %v959_v22, %v1059_v41 }
 0x2f7   :  { %v1069_v49 = vsel %vm1068_vm13, %v1067_v45, %v1062_v39 }
 0x2f8   :  { %v956_v33 = vpop.permute.xlu0 %955  ;;  %v917_v42 = vpop.permute.xlu1 %916 }
 0x2f9   :  { %v1139_v40 = vrot.slane %v956_v33, %v1052_v20  ;;  %v1074_v56 = vrot.slane %v917_v42, %v1073_v7 }
 0x2fb   :  { %v1140_v46 = vsel %vm1054_vm11, %v1139_v40, %v1135_v44  ;;  %v1076_v58 = vsel %vm1075_vm14, %v1074_v56, %v1069_v49 }
 0x2fc   :  { %v962_v43 = vpop.permute.xlu0 %961  ;;  %v1145_v11 = vsel %vm1061_vm12, %v1144_v55, %v1140_v46 }
 0x2fd   :  { %v1149_v47 = vrot.slane %v962_v43, %v1066_v32 }
 0x2ff   :  { %v1150_v50 = vsel %vm1068_vm13, %v1149_v47, %v1145_v11 }
 0x300   :  { %v965_v48 = vpop.permute.xlu0 %964 }
 0x301   :  { %v1154_v57 = vrot.slane %v965_v48, %v1073_v7 }
 0x303   :  { %v1155_v59 = vsel %vm1075_vm14, %v1154_v57, %v1150_v50 }
 0x304   :  { %v1157_v60 = vsel %vm1156_vm15, %v1155_v59, %v1076_v58 }
 0x305   :  { %1159 = vst [vmem:[%s1923_s7] sm:$0x3] %v1157_v60 }

</bundles_post_ra>
